<compile_context>
chip_gen: v6e
topology: v6e:2x2x1
jax: 0.10.0
libtpu: 0.0.40
codegen_flags: <defaults>
</compile_context>

<pallas_src>
import functools
import math

import jax
import jax.numpy as jnp
from jax.experimental import pallas as pl
from jax.experimental.pallas import tpu as pltpu

EPS = 1e-5
_LANES = 128
_SUBLANES = 8


def _round_up(x, m):
    return (x + m - 1) // m * m


@functools.lru_cache(maxsize=1)
def _tpu_config():
    """Generation-aware tile / VMEM budgets (conservative fallback = v7x-safe)."""
    kind = ""
    vmem_cap = None
    try:
        kind = (jax.devices()[0].device_kind or "").lower()
    except Exception:
        pass
    try:
        vmem_cap = int(pltpu.get_tpu_info().vmem_capacity_bytes)
    except Exception:
        vmem_cap = None
    if "v7" in kind:
        big_vmem = False
    elif vmem_cap is not None:
        big_vmem = vmem_cap >= 100 * 1024 * 1024
    else:
        big_vmem = any(t in kind for t in ("v4", "v5", "v6"))
    if big_vmem:      # v5e / v6e: 128 MiB VMEM, single TensorCore
        return dict(tile_bytes=8 << 20, vmem_limit=64 << 20,
                    fuse_bytes=12 << 20, fused_vmem_limit=100 << 20, n_split=1)
    # v7x (or unknown): 64 MiB VMEM per TC, 2 TensorCores
    return dict(tile_bytes=4 << 20, vmem_limit=48 << 20,
                fuse_bytes=6 << 20, fused_vmem_limit=56 << 20, n_split=2)


def _fold_factor(M, C):
    """Largest power-of-two k (<=32) dividing M that makes k*C lane-dense
    (multiple of 128 when possible).  k == 1 when C is already dense or M has
    no usable small divisor."""
    k = _LANES // math.gcd(C, _LANES)
    while k > 1 and (k > 32 or M % k != 0):
        k //= 2
    return k


def _fold_reduce(v, k, c):
    """v: (1, k*c) per-column partials on the folded layout.  Returns, at every
    lane l, the sum over the k fold copies of channel (l % c) -- the
    per-channel reduction already broadcast back across folds.  Lane rotations
    only (XLU), no reshapes."""
    out = v
    for j in range(1, k):
        out = out + pltpu.roll(v, shift=j * c, axis=1)
    return out


# --------------------------------------------------------------------------
# Fused single-block path: whole folded array resident in VMEM, centered
# (numerically safe) variance, 1 HBM read + 1 HBM write.
# --------------------------------------------------------------------------
def _fused_kernel(x_ref, g_ref, b_ref, o_ref, *, m_true, k, c):
    x = x_ref[...].astype(jnp.float32)                        # (R, k*c)
    inv_m = jnp.float32(1.0 / m_true)
    mean = _fold_reduce(jnp.sum(x, axis=0, keepdims=True), k, c) * inv_m
    xc = x - mean
    var = _fold_reduce(jnp.sum(xc * xc, axis=0, keepdims=True), k, c) * inv_m
    rstd = jax.lax.rsqrt(jnp.maximum(var, 0.0) + EPS)         # EUP
    scale = g_ref[...] * rstd
    o_ref[...] = (xc * scale + b_ref[...]).astype(o_ref.dtype)


# --------------------------------------------------------------------------
# Streaming pass 1: per-column partial sums / sums of squares of (x - pivot)
# on the folded layout.  Rows >= r_true (ragged last block or a clamped
# over-provisioned split block) are masked out; the hot loop is pure VPU adds
# on full (8, ce) sublane groups (HBM-bound, VPU has headroom).
# --------------------------------------------------------------------------
def _stats_kernel(x_ref, pivot_ref, sum_ref, sq_ref, *, r_true, unroll):
    p = pl.program_id(0)
    i = pl.program_id(1)
    steps = pl.num_programs(1)

    @pl.when(i == 0)
    def _():
        sum_ref[...] = jnp.zeros_like(sum_ref)
        sq_ref[...] = jnp.zeros_like(sq_ref)

    tr, ce = x_ref.shape
    base = (p * steps + i) * tr                      # global row of this block
    pivot = jnp.broadcast_to(pivot_ref[...], (_SUBLANES, ce))   # hoisted
    row_iota = jax.lax.broadcasted_iota(jnp.int32, (_SUBLANES, 1), 0)

    def body(g, carry):
        s, q = carry
        start = pl.multiple_of(g * _SUBLANES, _SUBLANES)
        valid = (row_iota + (base + start)) < r_true            # (8, 1)
        xg = x_ref[pl.ds(start, _SUBLANES), :].astype(jnp.float32) - pivot
        xg = jnp.where(valid, xg, 0.0)                # garbage rows -> 0
        return s + xg, q + xg * xg

    zero = jnp.zeros((_SUBLANES, ce), jnp.float32)
    s, q = jax.lax.fori_loop(0, tr // _SUBLANES, body, (zero, zero),
                             unroll=unroll)
    sum_ref[...] += s
    sq_ref[...] += q


# --------------------------------------------------------------------------
# Streaming pass 2: y = x * scale + shift on the lane-dense folded layout.
# Garbage rows of a ragged last block are computed but never written back.
# --------------------------------------------------------------------------
def _normalize_kernel(x_ref, scale_ref, shift_ref, o_ref):
    x = x_ref[...].astype(jnp.float32)
    o_ref[...] = (x * scale_ref[...] + shift_ref[...]).astype(o_ref.dtype)


def point_batch_norm(x, gamma, beta, *, tile_bytes=None, fuse_bytes=None,
                     n_split=None):
    """Training-mode BatchNorm1d over the last (channel) axis of x.

    x: [M, C] or [..., L, C] (any leading dims, channel last).
    gamma, beta: [C] affine parameters.
    """
    # TODO(synk): running_mean/running_var buffer updates and eval-mode
    # normalization are stateful PyTorch behavior; the training-mode forward
    # output (what this kernel computes) does not depend on them.
    cfg = _tpu_config()
    tile_bytes = cfg["tile_bytes"] if tile_bytes is None else tile_bytes
    fuse_bytes = cfg["fuse_bytes"] if fuse_bytes is None else fuse_bytes
    n_split = cfg["n_split"] if n_split is None else n_split
    vmem_limit = cfg["vmem_limit"]
    fused_vmem_limit = cfg["fused_vmem_limit"]

    orig_shape = x.shape
    C = orig_shape[-1]
    x2 = x.reshape(-1, C)                              # free (row-major)
    M = x2.shape[0]

    gamma_f = gamma.astype(jnp.float32).reshape(C)
    beta_f = beta.astype(jnp.float32).reshape(C)

    # Lane-dense fold [M, C] -> [M/k, k*C]; k | M so the reshape is free.
    k = _fold_factor(M, C)
    ce = k * C
    R = M // k
    xf = x2.reshape(R, ce)                             # free (row-major)

    work_bytes = M * C * 4                             # f32 working-set size

    # ------------------- fused resident single-pass path --------------------
    if work_bytes <= fuse_bytes:
        g_t = jnp.tile(gamma_f, (k,)).reshape(1, ce)
        b_t = jnp.tile(beta_f, (k,)).reshape(1, ce)
        y = pl.pallas_call(
            functools.partial(_fused_kernel, m_true=M, k=k, c=C),
            out_shape=jax.ShapeDtypeStruct((R, ce), x.dtype),
            grid=(1,),
            in_specs=[pl.BlockSpec((R, ce), lambda i: (0, 0)),
                      pl.BlockSpec((1, ce), lambda i: (0, 0)),
                      pl.BlockSpec((1, ce), lambda i: (0, 0))],
            out_specs=pl.BlockSpec((R, ce), lambda i: (0, 0)),
            compiler_params=pltpu.CompilerParams(
                dimension_semantics=("arbitrary",),
                vmem_limit_bytes=fused_vmem_limit),
        )(xf, g_t, b_t)
        return y.reshape(orig_shape)

    # ----------------------- streaming two-pass path ------------------------
    itemsize = x2.dtype.itemsize
    tr = max(_SUBLANES,
             (tile_bytes // (ce * itemsize)) // _SUBLANES * _SUBLANES)
    tr = min(tr, _round_up(R, _SUBLANES))
    nb = pl.cdiv(R, tr)                        # row blocks (last may be ragged)
    if nb < 2 * max(1, n_split):
        n_split = 1
    steps = pl.cdiv(nb, n_split)

    # Pivot (first row) shifts the accumulation so the single-pass variance
    # does not cancel catastrophically for off-center data (tiny HBM read).
    pivot_c = x2[0:1, :].astype(jnp.float32).reshape(C)
    pivot_t = jnp.tile(pivot_c, (k,)).reshape(1, ce)

    def x_map(p, i):
        # Clamp so an over-provisioned split never requests a fully
        # out-of-bounds block; clamped duplicates are masked out in-kernel.
        return (jnp.minimum(p * steps + i, nb - 1), 0)

    unroll = min(8, max(1, tr // _SUBLANES))
    # NOTE: if a trace shows exposed DMA between stats steps, add
    # pipeline_mode=pl.Buffered(3) to the x BlockSpec below on v5e/v6e
    # (ample VMEM headroom there); keep 2-deep on v7x.
    s_p, q_p = pl.pallas_call(
        functools.partial(_stats_kernel, r_true=R, unroll=unroll),
        out_shape=(jax.ShapeDtypeStruct((n_split * _SUBLANES, ce), jnp.float32),
                   jax.ShapeDtypeStruct((n_split * _SUBLANES, ce), jnp.float32)),
        grid=(n_split, steps),
        in_specs=[pl.BlockSpec((tr, ce), x_map),
                  pl.BlockSpec((1, ce), lambda p, i: (0, 0))],
        out_specs=(pl.BlockSpec((_SUBLANES, ce), lambda p, i: (p, 0)),
                   pl.BlockSpec((_SUBLANES, ce), lambda p, i: (p, 0))),
        compiler_params=pltpu.CompilerParams(
            dimension_semantics=("parallel", "arbitrary"),
            vmem_limit_bytes=vmem_limit),
    )(xf, pivot_t)

    # Tiny glue: fold split/sublane/fold partials and build scale/shift.
    s = jnp.sum(s_p, axis=0).reshape(k, C).sum(axis=0)       # (C,) sum(x - p)
    q = jnp.sum(q_p, axis=0).reshape(k, C).sum(axis=0)       # (C,) sum((x-p)^2)
    inv_m = jnp.float32(1.0 / M)
    dmean = s * inv_m
    mean = pivot_c + dmean
    var = jnp.maximum(q * inv_m - dmean * dmean, 0.0)
    rstd = jax.lax.rsqrt(var + EPS)
    scale = gamma_f * rstd
    shift = beta_f - mean * scale
    scale_t = jnp.tile(scale, (k,)).reshape(1, ce)
    shift_t = jnp.tile(shift, (k,)).reshape(1, ce)

    yf = pl.pallas_call(
        _normalize_kernel,
        out_shape=jax.ShapeDtypeStruct((R, ce), x.dtype),
        grid=(nb,),
        in_specs=[pl.BlockSpec((tr, ce), lambda i: (i, 0)),
                  pl.BlockSpec((1, ce), lambda i: (0, 0)),
                  pl.BlockSpec((1, ce), lambda i: (0, 0))],
        out_specs=pl.BlockSpec((tr, ce), lambda i: (i, 0)),
        compiler_params=pltpu.CompilerParams(
            dimension_semantics=("parallel",),
            vmem_limit_bytes=vmem_limit),
    )(xf, scale_t, shift_t)

    return yf.reshape(orig_shape)          # free reshape, no slice, no pad


# --------------------------------------------------------------------------
# Reference + tests
# --------------------------------------------------------------------------
def _reference(x, gamma, beta):
    C = x.shape[-1]
    x2 = x.reshape(-1, C).astype(jnp.float32)
    mean = jnp.mean(x2, axis=0, keepdims=True)
    var = jnp.mean((x2 - mean) ** 2, axis=0, keepdims=True)
    g = gamma.astype(jnp.float32)[None, :]
    b = beta.astype(jnp.float32)[None, :]
    y = (x2 - mean) * jax.lax.rsqrt(var + EPS) * g + b
    return y.reshape(x.shape)


def _check(y, x, gamma, beta, atol, rtol):
    assert y.shape == x.shape and y.dtype == x.dtype
    ref = _reference(x, gamma, beta)
    yf = y.astype(jnp.float32)
    assert jnp.allclose(yf, ref, atol=atol, rtol=rtol), \
        float(jnp.max(jnp.abs(yf - ref)))


if __name__ == "__main__":
    key = jax.random.PRNGKey(0)
    k1, k2, k3, k4, k5, k6, k7 = jax.random.split(key, 7)

    C = 32                                        # embed_channels
    gamma = 1.0 + 0.1 * jax.random.normal(k3, (C,), dtype=jnp.float32)
    beta = 0.1 * jax.random.normal(k4, (C,), dtype=jnp.float32)

    pbn = jax.jit(point_batch_norm)

    # 3-D case [B*N, L, C] -> fused folded path (k=4, ce=128 lanes).
    x3 = jax.random.normal(k1, (16, 8, C), dtype=jnp.float32)
    y3 = jax.block_until_ready(pbn(x3, gamma, beta))
    _check(y3, x3, gamma, beta, 1e-4, 1e-4)

    # 2-D case [B*N, C] -> fused folded path.
    x2 = jax.random.normal(k2, (128, C), dtype=jnp.float32)
    y2 = jax.block_until_ready(pbn(x2, gamma, beta))
    _check(y2, x2, gamma, beta, 1e-4, 1e-4)

    # bf16 input -> fused path with f32 compute.
    xh = jax.random.normal(k5, (64, 8, C), dtype=jnp.float32).astype(jnp.bfloat16)
    yh = jax.block_until_ready(pbn(xh, gamma, beta))
    _check(yh, xh, gamma, beta, 5e-2, 5e-2)

    # Streaming two-pass path (forced): M=4100 is divisible by the fold k=4 but
    # not by 8*k, exercising the ragged-last-block mask, the lane-dense fold
    # (32 -> 128 lanes), the 2-way stats split (with a clamped over-provisioned
    # block) and the pivot-shifted variance on off-center data.
    pbn_stream = jax.jit(functools.partial(
        point_batch_norm, tile_bytes=64 * 1024, fuse_bytes=0, n_split=2))
    xb = jax.random.normal(k6, (4100, C), dtype=jnp.float32) * 3.0 + 1.5
    yb = jax.block_until_ready(pbn_stream(xb, gamma, beta))
    _check(yb, xb, gamma, beta, 1e-3, 1e-3)

    # Streaming path with no usable fold (M=4099 is prime -> k=1): exercises
    # the lane-sparse fallback with masked ragged rows.
    pbn_stream1 = jax.jit(functools.partial(
        point_batch_norm, tile_bytes=64 * 1024, fuse_bytes=0))
    xa = jax.random.normal(k7, (4099, C), dtype=jnp.float32)
    ya = jax.block_until_ready(pbn_stream1(xa, gamma, beta))
    _check(ya, xa, gamma, beta, 1e-3, 1e-3)

    print("KERNEL_OK")
</pallas_src>

<mosaic_0001>
module attributes {stable_mosaic.version = 11 : i64} {
  func.func @_fused_kernel(%arg0: i32, %arg1: memref<32x128xf32, #tpu.memory_space<vmem>>, %arg2: memref<1x128xf32, #tpu.memory_space<vmem>>, %arg3: memref<1x128xf32, #tpu.memory_space<vmem>>, %arg4: memref<32x128xf32, #tpu.memory_space<vmem>>) attributes {dimension_semantics = [#tpu.dimension_semantics<arbitrary>], iteration_bounds = array<i64: 1>, scalar_prefetch = 0 : i64, scratch_operands = 0 : i64, tpu.core_type = #tpu.core_type<tc>, window_params = [{pipeline_mode = #tpu.pipeline_mode<synchronous>, transform_indices = @transform_0, window_bounds = array<i64: 32, 128>}, {pipeline_mode = #tpu.pipeline_mode<synchronous>, transform_indices = @transform_1, window_bounds = array<i64: 1, 128>}, {pipeline_mode = #tpu.pipeline_mode<synchronous>, transform_indices = @transform_2, window_bounds = array<i64: 1, 128>}, {pipeline_mode = #tpu.pipeline_mode<synchronous>, transform_indices = @transform_3, window_bounds = array<i64: 32, 128>}]} {
    %c0 = arith.constant 0 : index
    %c0_0 = arith.constant 0 : index
    %0 = vector.load %arg1[%c0, %c0_0] : memref<32x128xf32, #tpu.memory_space<vmem>>, vector<32x128xf32>
    %cst = arith.constant dense<0.000000e+00> : vector<128xf32>
    %1 = vector.multi_reduction <add>, %0, %cst [0] : vector<32x128xf32> to vector<128xf32>
    %2 = vector.shape_cast %1 : vector<128xf32> to vector<1x128xf32>
    %c32_i32 = arith.constant 32 : i32
    %3 = tpu.dynamic_rotate %2 by %c32_i32 dim 1 : vector<1x128xf32>, i32 -> vector<1x128xf32>
    %4 = arith.addf %2, %3 : vector<1x128xf32>
    %c64_i32 = arith.constant 64 : i32
    %5 = tpu.dynamic_rotate %2 by %c64_i32 dim 1 : vector<1x128xf32>, i32 -> vector<1x128xf32>
    %6 = arith.addf %4, %5 : vector<1x128xf32>
    %c96_i32 = arith.constant 96 : i32
    %7 = tpu.dynamic_rotate %2 by %c96_i32 dim 1 : vector<1x128xf32>, i32 -> vector<1x128xf32>
    %8 = arith.addf %6, %7 : vector<1x128xf32>
    %cst_1 = arith.constant 7.812500e-03 : f32
    %9 = vector.broadcast %cst_1 : f32 to vector<1x128xf32>
    %10 = arith.mulf %8, %9 : vector<1x128xf32>
    %11 = vector.broadcast %10 : vector<1x128xf32> to vector<32x128xf32>
    %12 = arith.subf %0, %11 : vector<32x128xf32>
    %13 = arith.mulf %12, %12 : vector<32x128xf32>
    %cst_2 = arith.constant dense<0.000000e+00> : vector<128xf32>
    %14 = vector.multi_reduction <add>, %13, %cst_2 [0] : vector<32x128xf32> to vector<128xf32>
    %15 = vector.shape_cast %14 : vector<128xf32> to vector<1x128xf32>
    %c32_i32_3 = arith.constant 32 : i32
    %16 = tpu.dynamic_rotate %15 by %c32_i32_3 dim 1 : vector<1x128xf32>, i32 -> vector<1x128xf32>
    %17 = arith.addf %15, %16 : vector<1x128xf32>
    %c64_i32_4 = arith.constant 64 : i32
    %18 = tpu.dynamic_rotate %15 by %c64_i32_4 dim 1 : vector<1x128xf32>, i32 -> vector<1x128xf32>
    %19 = arith.addf %17, %18 : vector<1x128xf32>
    %c96_i32_5 = arith.constant 96 : i32
    %20 = tpu.dynamic_rotate %15 by %c96_i32_5 dim 1 : vector<1x128xf32>, i32 -> vector<1x128xf32>
    %21 = arith.addf %19, %20 : vector<1x128xf32>
    %cst_6 = arith.constant 7.812500e-03 : f32
    %22 = vector.broadcast %cst_6 : f32 to vector<1x128xf32>
    %23 = arith.mulf %21, %22 : vector<1x128xf32>
    %cst_7 = arith.constant 0.000000e+00 : f32
    %24 = vector.broadcast %cst_7 : f32 to vector<1x128xf32>
    %25 = arith.maximumf %23, %24 : vector<1x128xf32>
    %cst_8 = arith.constant 9.99999974E-6 : f32
    %26 = vector.broadcast %cst_8 : f32 to vector<1x128xf32>
    %27 = arith.addf %25, %26 : vector<1x128xf32>
    %28 = math.rsqrt %27 : vector<1x128xf32>
    %c0_9 = arith.constant 0 : index
    %c0_10 = arith.constant 0 : index
    %29 = vector.load %arg2[%c0_9, %c0_10] : memref<1x128xf32, #tpu.memory_space<vmem>>, vector<1x128xf32>
    %30 = arith.mulf %29, %28 : vector<1x128xf32>
    %31 = vector.broadcast %30 : vector<1x128xf32> to vector<32x128xf32>
    %32 = arith.mulf %12, %31 : vector<32x128xf32>
    %c0_11 = arith.constant 0 : index
    %c0_12 = arith.constant 0 : index
    %33 = vector.load %arg3[%c0_11, %c0_12] : memref<1x128xf32, #tpu.memory_space<vmem>>, vector<1x128xf32>
    %34 = vector.broadcast %33 : vector<1x128xf32> to vector<32x128xf32>
    %35 = arith.addf %32, %34 : vector<32x128xf32>
    %c0_13 = arith.constant 0 : index
    %c0_14 = arith.constant 0 : index
    %36 = vector.load %arg4[%c0_13, %c0_14] : memref<32x128xf32, #tpu.memory_space<vmem>>, vector<32x128xf32>
    tpu.vector_store %arg4[%c0_13, %c0_14], %35 {strides = array<i32>} : memref<32x128xf32, #tpu.memory_space<vmem>>, vector<32x128xf32>,
    return
  }
  func.func @transform_0(%arg0: i32) -> (i32, i32) {
    %c0_i32 = arith.constant 0 : i32
    %c0_i32_0 = arith.constant 0 : i32
    %c0_i32_1 = arith.constant 0 : i32
    return %c0_i32, %c0_i32_0 : i32, i32
  }
  func.func @transform_1(%arg0: i32) -> (i32, i32) {
    %c0_i32 = arith.constant 0 : i32
    %c0_i32_0 = arith.constant 0 : i32
    %c0_i32_1 = arith.constant 0 : i32
    return %c0_i32, %c0_i32_0 : i32, i32
  }
  func.func @transform_2(%arg0: i32) -> (i32, i32) {
    %c0_i32 = arith.constant 0 : i32
    %c0_i32_0 = arith.constant 0 : i32
    %c0_i32_1 = arith.constant 0 : i32
    return %c0_i32, %c0_i32_0 : i32, i32
  }
  func.func @transform_3(%arg0: i32) -> (i32, i32) {
    %c0_i32 = arith.constant 0 : i32
    %c0_i32_0 = arith.constant 0 : i32
    %c0_i32_1 = arith.constant 0 : i32
    return %c0_i32, %c0_i32_0 : i32, i32
  }
}

</mosaic_0001>

<bundles_post_ra>
// kernel: tile.14
= control target key start
LH: loop header
LB: loop body
LE: loop exit
PB: predicated region body
PF: predicated region fallthrough
CT: control target
= control target key end

     0   :  { %vm8_vm0 = vcmask 261120   ;;  %s40_s8 = smov 32   ;;  %s41_s9 = smov 64   ;;  %vm14_vm1 = vcmask 1048320   ;;  %vm20_vm2 = vcmask 785920   ;;  %vm26_vm3 = vcmask 523520   ;;  %s58_s0 = inlined_call_operand.vmem [shape: f32[4,32], index: 0, kind: input, shape index: {}]   ;;  %s59_s1 = inlined_call_operand.vmem [shape: f32[1,128], index: 1, kind: output, shape index: {}]  }
   0x1   :  { %v5_v0 = vld [vmem:[%s58_s0] sm:$0xf]  ;;  %s39_s0 = smov 96  }
   0x2   :  { %6 = vst [vmem:[#allocation1] sm:$0xf] %v5_v0 }
   0x9   :  { %v11_v1 = vld [vmem:[#allocation1 + $0x3] sm:$0x1]   ;;  %v23_v2 = vld [vmem:[#allocation1 + $0x1] sm:$0x1]   ;;  %v7_v3 = vld [vmem:[#allocation1] sm:$0x1]  }
   0xa   :  { %12 = vrot.lane.b32.xlu0 %v11_v1, %s39_s0  ;;  %24 = vrot.lane.b32.xlu1 %v23_v2, %s40_s8  ;;  %v17_v4 = vld [vmem:[#allocation1 + $0x2] sm:$0x1]   ;;  %9 = vst.msk [vmem:[#allocation0] sm:$0x1] %vm8_vm0, %v7_v3  }
   0xe   :  { %18 = vrot.lane.b32.xlu0 %v17_v4, %s41_s9 }
  0x7c   :  { %v13_v5 = vpop.permute.xlu0 %12   ;;  %v25_v6 = vpop.permute.xlu1 %24  }
  0x7d   :  { %15 = vst.msk [vmem:[#allocation0] sm:$0x1] %vm14_vm1, %v13_v5  }
  0x80   :  { %v19_v7 = vpop.permute.xlu0 %18  }
  0x81   :  { %21 = vst.msk [vmem:[#allocation0] sm:$0x1] %vm20_vm2, %v19_v7  }
  0x82   :  { %27 = vst.msk [vmem:[#allocation0] sm:$0x1] %vm26_vm3, %v25_v6  }
  0x89   :  { %v32_v8 = vld [vmem:[#allocation0] sm:$0x1] }
  0x8a   :  { %35 = vst [vmem:[%s59_s1] sm:$0x1] %v32_v8 }

// kernel: tile.13
= control target key start
LH: loop header
LB: loop body
LE: loop exit
PB: predicated region body
PF: predicated region fallthrough
CT: control target
= control target key end

     0   :  { %s22_s0 = inlined_call_operand.vmem [shape: f32[32], index: 0, kind: input, shape index: {}]   ;;  %s23_s1 = inlined_call_operand.vmem [shape: f32[4,32], index: 1, kind: output, shape index: {}]  }
   0x1   :  { %v4_v0 = vld [vmem:[%s22_s0] ss:$0 sm:$0xff] }
   0x2   :  { %5 = vst [vmem:[%s23_s1] sm:$0xf] %v4_v0 }

// kernel: point_batch_norm.1
= control target key start
LH: loop header
LB: loop body
LE: loop exit
PB: predicated region body
PF: predicated region fallthrough
CT: control target
= control target key end

     0   :  { %s108_s20 = smov 32   ;;  %s109_s21 = smov 96   ;;  %v37_v13 = vlaneseq  ;;  %s165_s0 = inlined_call_operand.vmem [shape: f32[32,128], index: 0, kind: input, shape index: {}]   ;;  %s166_s1 = inlined_call_operand.vmem [shape: f32[1,128], index: 1, kind: input, shape index: {}]   ;;  %s167_s2 = inlined_call_operand.vmem [shape: f32[1,128], index: 2, kind: input, shape index: {}]   ;;  %s168_s3 = inlined_call_operand.vmem [shape: f32[32,128], index: 3, kind: output, shape index: {}]  }
   0x1   :  { %v14_v0 = vld [vmem:[%s165_s0] sm:$0xff]  ;;  %v15_v1 = vld [vmem:[%s165_s0 + $0x8] sm:$0xff]  ;;  %v16_v2 = vld [vmem:[%s165_s0 + $0x10] sm:$0xff]  ;;  %s110_s22 = smov 64  }
   0x2   :  { %v18_v3 = vadd.f32 %v15_v1, %v14_v0  ;;  %v17_v4 = vld [vmem:[%s165_s0 + $0x18] sm:$0xff]  ;;  %v38_v16 = vshrl.u32 %v37_v13, 7  ;;  %v71_v50 = vld [vmem:[%s166_s1] sm:$0x1] }
   0x3   :  { %v102_v54 = vld [vmem:[%s167_s2] ss:$0 sm:$0xff] }
   0x4   :  { %v19_v5 = vadd.f32 %v18_v3, %v16_v2  ;;  %v39_v20 = vsub.s32 0, %v38_v16 }
   0x6   :  { %v20_v6 = vadd.f32 %v19_v5, %v17_v4 }
   0x8   :  { %v21_v7 = vrot.slane %v20_v6, 4 }
   0xa   :  { %v22_v8 = vadd.f32 %v21_v7, %v20_v6 }
   0xc   :  { %v23_v9 = vrot.slane %v22_v8, 2 }
   0xe   :  { %v24_v10 = vadd.f32 %v23_v9, %v22_v8 }
  0x10   :  { %v25_v11 = vrot.slane %v24_v10, 1 }
  0x12   :  { %v26_v12 = vadd.f32 %v25_v11, %v24_v10 }
  0x14   :  { %27 = vrot.lane.b32.xlu0 %v26_v12, %s108_s20  ;;  %33 = vrot.lane.b32.xlu1 %v26_v12, %s109_s21 }
  0x18   :  { %30 = vrot.lane.b32.xlu0 %v26_v12, %s110_s22 }
  0x86   :  { %v28_v14 = vpop.permute.xlu0 %27  ;;  %v34_v18 = vpop.permute.xlu1 %33 }
  0x87   :  { %v29_v15 = vadd.f32 %v28_v14, %v26_v12 }
  0x8a   :  { %v31_v17 = vpop.permute.xlu0 %30 }
  0x8b   :  { %v32_v19 = vadd.f32 %v31_v17, %v29_v15 }
  0x8d   :  { %v35_v21 = vadd.f32 %v34_v18, %v32_v19 }
  0x8f   :  { %v36_v22 = vmul.f32 0.0078125, %v35_v21 }
  0x91   :  { %v40_v23 = vrot.slane %v36_v22, %v39_v20 }
  0x93   :  { %v41_v24 = vsub.f32 %v14_v0, %v40_v23  ;;  %v42_v25 = vsub.f32 %v15_v1, %v40_v23  ;;  %v43_v26 = vsub.f32 %v16_v2, %v40_v23  ;;  %v44_v27 = vsub.f32 %v17_v4, %v40_v23 }
  0x95   :  { %v45_v28 = vmul.f32 %v41_v24, %v41_v24  ;;  %v46_v29 = vmul.f32 %v42_v25, %v42_v25  ;;  %v47_v30 = vmul.f32 %v43_v26, %v43_v26  ;;  %v48_v32 = vmul.f32 %v44_v27, %v44_v27 }
  0x97   :  { %v49_v31 = vadd.f32 %v46_v29, %v45_v28 }
  0x99   :  { %v50_v33 = vadd.f32 %v49_v31, %v47_v30 }
  0x9b   :  { %v51_v34 = vadd.f32 %v50_v33, %v48_v32 }
  0x9d   :  { %v52_v35 = vrot.slane %v51_v34, 4 }
  0x9f   :  { %v53_v36 = vadd.f32 %v52_v35, %v51_v34 }
  0xa1   :  { %v54_v37 = vrot.slane %v53_v36, 2 }
  0xa3   :  { %v55_v38 = vadd.f32 %v54_v37, %v53_v36 }
  0xa5   :  { %v56_v39 = vrot.slane %v55_v38, 1 }
  0xa7   :  { %v57_v40 = vadd.f32 %v56_v39, %v55_v38 }
  0xa9   :  { %61 = vrot.lane.b32.xlu0 %v57_v40, %s110_s22  ;;  %58 = vrot.lane.b32.xlu1 %v57_v40, %s108_s20 }
  0xad   :  { %64 = vrot.lane.b32.xlu1 %v57_v40, %s109_s21 }
 0x11b   :  { %v59_v41 = vpop.permute.xlu1 %58  ;;  %v62_v43 = vpop.permute.xlu0 %61 }
 0x11c   :  { %v60_v42 = vadd.f32 %v59_v41, %v57_v40 }
 0x11e   :  { %v63_v44 = vadd.f32 %v62_v43, %v60_v42 }
 0x11f   :  { %v65_v45 = vpop.permute.xlu1 %64 }
 0x120   :  { %v66_v46 = vadd.f32 %v65_v45, %v63_v44 }
 0x122   :  { %v67_v47 = vmul.f32 0.0078125, %v66_v46 }
 0x124   :  { %v68_v48 = vmax.f32 %v67_v47, 0.0 }
 0x126   :  { %v69_v49 = vadd.f32 1e-05, %v68_v48 }
 0x128   :  { %106 = vrsqrt.f32 %v69_v49 }
 0x135   :  { %v107_v51 = vpop.eup %106 }
 0x136   :  { %v72_v52 = vmul.f32 %v107_v51, %v71_v50 }
 0x138   :  { %v77_v53 = vrot.slane %v72_v52, %v39_v20 }
 0x13a   :  { %v79_v55 = vmul.f32 %v77_v53, %v41_v24  ;;  %v80_v56 = vmul.f32 %v77_v53, %v42_v25  ;;  %v81_v57 = vmul.f32 %v77_v53, %v43_v26  ;;  %v82_v58 = vmul.f32 %v77_v53, %v44_v27 }
 0x13c   :  { %v90_v59 = vadd.f32 %v102_v54, %v79_v55  ;;  %v91_v60 = vadd.f32 %v102_v54, %v80_v56  ;;  %v92_v61 = vadd.f32 %v102_v54, %v81_v57  ;;  %v93_v62 = vadd.f32 %v102_v54, %v82_v58 }
 0x13e   :  { %94 = vst [vmem:[%s168_s3] sm:$0xff] %v90_v59  ;;  %95 = vst [vmem:[%s168_s3 + $0x8] sm:$0xff] %v91_v60 }
 0x13f   :  { %96 = vst [vmem:[%s168_s3 + $0x10] sm:$0xff] %v92_v61  ;;  %97 = vst [vmem:[%s168_s3 + $0x18] sm:$0xff] %v93_v62 }

</bundles_post_ra>
